<compile_context>
chip_gen: v7x
topology: tpu7x:2x2x1
jax: 0.10.0
libtpu: 0.0.40
codegen_flags: <defaults>
</compile_context>

<pallas_src>
import math

import jax
import jax.numpy as jnp
from jax.experimental import pallas as pl
from jax.experimental.pallas import tpu as pltpu


# ---------------------------------------------------------------------------
# Kernels
# ---------------------------------------------------------------------------

def _mm_kernel(x_ref, wt_ref, o_ref, acc_ref):
    """Multi-K-step matmul: f32 VMEM accumulator, init/store via pl.when."""
    @pl.when(pl.program_id(2) == 0)
    def _():
        acc_ref[...] = jnp.zeros_like(acc_ref)

    acc_ref[...] += jnp.dot(x_ref[...], wt_ref[...],
                            preferred_element_type=jnp.float32)

    @pl.when(pl.program_id(2) == pl.num_programs(2) - 1)
    def _():
        o_ref[...] = acc_ref[...].astype(o_ref.dtype)


def _mm_bias_kernel(x_ref, wt_ref, b_ref, o_ref, acc_ref):
    @pl.when(pl.program_id(2) == 0)
    def _():
        acc_ref[...] = jnp.zeros_like(acc_ref)

    acc_ref[...] += jnp.dot(x_ref[...], wt_ref[...],
                            preferred_element_type=jnp.float32)

    @pl.when(pl.program_id(2) == pl.num_programs(2) - 1)
    def _():
        o_ref[...] = (acc_ref[...] + b_ref[...].astype(jnp.float32)
                      ).astype(o_ref.dtype)


def _mm_kernel_1k(x_ref, wt_ref, o_ref):
    """Single-K-step variant: skips the f32 scratch and its RMW pass."""
    o_ref[...] = jnp.dot(x_ref[...], wt_ref[...],
                         preferred_element_type=jnp.float32).astype(o_ref.dtype)


def _mm_bias_kernel_1k(x_ref, wt_ref, b_ref, o_ref):
    o_ref[...] = (jnp.dot(x_ref[...], wt_ref[...],
                          preferred_element_type=jnp.float32)
                  + b_ref[...].astype(jnp.float32)).astype(o_ref.dtype)


# ---------------------------------------------------------------------------
# Hardware-aware tile selection
# ---------------------------------------------------------------------------

def _hw_params():
    """Returns (vmem_limit_bytes, tensorcores_per_chip, tm, tn, tk targets)."""
    kind = ""
    try:
        kind = jax.devices()[0].device_kind.lower()
    except Exception:
        pass
    cap = None
    try:
        cap = getattr(pltpu.get_tpu_info(), "vmem_capacity_bytes", None)
    except Exception:
        cap = None
    if not cap:
        # v7x has 64 MiB VMEM per TensorCore; v5e/v6e have 128 MiB.
        cap = (64 if ("v7" in kind or "7x" in kind) else 128) * 1024 * 1024
    # Leave headroom for compiler-internal scratch/spill.
    vmem_limit = int(min(cap * 3 // 4, 100 * 1024 * 1024))  # 48 MiB v7x, 96 MiB v5e/v6e
    cores = 2 if ("v7" in kind or "7x" in kind) else 1
    if "v5 lite" in kind or "v5e" in kind:
        tm, tn, tk = 512, 1024, 1024     # v5e: MXU-bound past ~240 flop/byte
    else:
        tm, tn, tk = 1024, 2048, 2048    # v6e/v7x: ~655 flop/byte crossover
    return vmem_limit, cores, tm, tn, tk


def _largest_divisor_tile(dim, target, granule):
    """Largest d <= target with dim % d == 0 and d % granule == 0, else None."""
    t = (target // granule) * granule
    while t >= granule:
        if dim % t == 0:
            return t
        t -= granule
    return None


def _choose_tiles(M, N, K, xsz, wsz, osz, bsz, budget, cores, tm, tn, tk):
    """Pick (bm, bn, bk): big output tiles for arithmetic intensity, shrunk
    only to respect the VMEM budget."""
    bm = M if M <= tm else tm
    bn = N if N <= tn else tn
    bk = K if K <= tk else tk

    # v7x: 2 TensorCores per chip -> ensure the parallel grid axes provide at
    # least two blocks so both cores get work.
    if cores >= 2 and pl.cdiv(M, bm) * pl.cdiv(N, bn) < 2 and N > 128:
        half = -(-((N + 1) // 2) // 128) * 128
        if 128 <= half < N:
            bn = half

    def footprint(bm_, bn_, bk_):
        fp = 2 * bm_ * bk_ * xsz           # x tile (double-buffered)
        fp += 2 * bk_ * bn_ * wsz          # w^T tile (double-buffered)
        fp += 2 * bm_ * bn_ * osz          # out tile (double-buffered)
        fp += 2 * bn_ * bsz                # bias tile (double-buffered)
        if pl.cdiv(K, bk_) > 1:
            fp += bm_ * bn_ * 4            # f32 accumulator scratch
        return fp

    # Shrink to fit: K first (intensity depends only on bm, bn), then N, then M.
    while footprint(bm, bn, bk) > budget and bk > 512:
        bk = max(512, (bk // 2 // 128) * 128)
    while footprint(bm, bn, bk) > budget and bn > 512:
        bn = max(512, (bn // 2 // 128) * 128)
    while footprint(bm, bn, bk) > budget and bm > 256:
        bm = max(256, (bm // 2 // 8) * 8)

    # Prefer a bk that divides K exactly (avoids a zero-pad HBM round trip).
    if bk < K and K % bk != 0:
        d = _largest_divisor_tile(K, bk, 128)
        if d is not None and d >= max(256, bk // 2):
            bk = d
    return bm, bn, bk


# ---------------------------------------------------------------------------
# Wrapper
# ---------------------------------------------------------------------------

def linear_forward(x, weight=None, bias=None, *, weight_t=None,
                   block_m=None, block_n=None, block_k=None):
    """y = x @ weight.T (+ bias).

    x: (..., K); weight: (N, K) as stored by the PyTorch module; bias: (N,)
    or None.  Optionally pass `weight_t` of shape (K, N) (pre-transposed once
    per layer) to skip the in-wrapper transpose on repeated calls.
    """
    *lead, K = x.shape
    if weight_t is None:
        N, K_w = weight.shape
        wt = jnp.transpose(weight)     # (K, N): MXU-native RHS layout.
        w_dtype = weight.dtype
    else:
        K_w, N = weight_t.shape
        wt = weight_t
        w_dtype = weight_t.dtype
    assert K == K_w, (K, K_w)

    M = math.prod(lead) if lead else 1
    x2d = x.reshape(M, K)

    out_dtype = jnp.promote_types(x.dtype, w_dtype)
    xsz = jnp.dtype(x.dtype).itemsize
    wsz = jnp.dtype(w_dtype).itemsize
    osz = jnp.dtype(out_dtype).itemsize
    bsz = jnp.dtype(bias.dtype).itemsize if bias is not None else 0

    vmem_limit, cores, tm, tn, tk = _hw_params()
    tile_budget = int(vmem_limit * 0.85)

    bm, bn, bk = _choose_tiles(M, N, K, xsz, wsz, osz, bsz,
                               tile_budget, cores, tm, tn, tk)
    if block_m is not None:
        bm = min(block_m, M)
    if block_n is not None:
        bn = min(block_n, N)
    if block_k is not None:
        bk = min(block_k, K)

    # Only the contraction dim ever needs (exact, zero) padding; partial M / N
    # blocks are masked by Pallas on output writeback.
    kt = pl.cdiv(K, bk)
    Kp = kt * bk
    if Kp != K:
        x2d = jnp.pad(x2d, ((0, 0), (0, Kp - K)))
        wt = jnp.pad(wt, ((0, Kp - K), (0, 0)))

    grid = (pl.cdiv(M, bm), pl.cdiv(N, bn), kt)
    multi_k = kt > 1

    in_specs = [
        pl.BlockSpec((bm, bk), lambda i, j, k: (i, k)),
        pl.BlockSpec((bk, bn), lambda i, j, k: (k, j)),
    ]
    operands = [x2d, wt]
    if bias is not None:
        in_specs.append(pl.BlockSpec((1, bn), lambda i, j, k: (0, j)))
        operands.append(bias.reshape(1, N))
        kernel = _mm_bias_kernel if multi_k else _mm_bias_kernel_1k
    else:
        kernel = _mm_kernel if multi_k else _mm_kernel_1k
    scratch = [pltpu.VMEM((bm, bn), jnp.float32)] if multi_k else []

    # Actual HBM traffic: x is re-read once per N-block, W once per M-block.
    cost = pl.CostEstimate(
        flops=2 * M * N * K,
        transcendentals=0,
        bytes_accessed=(M * Kp * xsz) * grid[1]
        + (N * Kp * wsz) * grid[0]
        + M * N * osz,
    )

    out2d = pl.pallas_call(
        kernel,
        out_shape=jax.ShapeDtypeStruct((M, N), out_dtype),
        grid_spec=pltpu.PrefetchScalarGridSpec(
            num_scalar_prefetch=0,
            grid=grid,
            in_specs=in_specs,
            out_specs=pl.BlockSpec((bm, bn), lambda i, j, k: (i, j)),
            scratch_shapes=scratch,
        ),
        compiler_params=pltpu.CompilerParams(
            dimension_semantics=("parallel", "parallel", "arbitrary"),
            vmem_limit_bytes=vmem_limit,
        ),
        cost_estimate=cost,
    )(*operands)

    return out2d.reshape(*lead, N)


def linear_ref(x, weight, bias=None):
    """Pure-JAX reference mirroring F.linear with f32 accumulation."""
    out = jnp.einsum("...k,nk->...n", x, weight,
                     preferred_element_type=jnp.float32)
    if bias is not None:
        out = out + bias.astype(jnp.float32)
    return out.astype(jnp.promote_types(x.dtype, weight.dtype))


if __name__ == "__main__":
    key = jax.random.PRNGKey(0)
    kx, kw = jax.random.split(key)

    # Small shapes consistent with the module: (batch, seq, in_features) -> out_features.
    batch, seq, in_features, out_features = 2, 8, 256, 512

    x = jax.random.normal(kx, (batch, seq, in_features),
                          dtype=jnp.float32).astype(jnp.bfloat16)
    # Linear.dtype defaults to bf16 (element_size > 1 -> F.linear path, no bias).
    weight = (0.02 * jax.random.normal(kw, (out_features, in_features),
                                       dtype=jnp.float32)).astype(jnp.bfloat16)

    ref = linear_ref(x, weight)

    # Default (auto-tiled) path: full-extent tiles here -> single-K kernel.
    out = jax.block_until_ready(linear_forward(x, weight))
    assert out.shape == ref.shape and out.dtype == ref.dtype
    assert jnp.allclose(out.astype(jnp.float32), ref.astype(jnp.float32),
                        atol=3e-2, rtol=3e-2), "mismatch vs reference (auto tiles)"

    # Exercise the multi-K-step accumulator kernel with explicit small tiles.
    out2 = jax.block_until_ready(
        linear_forward(x, weight, block_m=16, block_n=128, block_k=128))
    assert jnp.allclose(out2.astype(jnp.float32), ref.astype(jnp.float32),
                        atol=3e-2, rtol=3e-2), "mismatch vs reference (multi-K tiles)"

    print("KERNEL_OK")
</pallas_src>

<mosaic_0001>
module attributes {stable_mosaic.version = 11 : i64} {
  func.func @_mm_kernel_1k(%arg0: i32, %arg1: i32, %arg2: i32, %arg3: memref<16x256xbf16, #tpu.memory_space<vmem>>, %arg4: memref<256x512xbf16, #tpu.memory_space<vmem>>, %arg5: memref<16x512xbf16, #tpu.memory_space<vmem>>) attributes {dimension_semantics = [#tpu.dimension_semantics<parallel>, #tpu.dimension_semantics<parallel>, #tpu.dimension_semantics<arbitrary>], iteration_bounds = array<i64: 1, 1, 1>, scalar_prefetch = 0 : i64, scratch_operands = 0 : i64, tpu.core_type = #tpu.core_type<tc>, window_params = [{transform_indices = @transform_0, window_bounds = array<i64: 16, 256>}, {transform_indices = @transform_1, window_bounds = array<i64: 256, 512>}, {transform_indices = @transform_2, window_bounds = array<i64: 16, 512>}]} {
    %c0 = arith.constant 0 : index
    %c0_0 = arith.constant 0 : index
    %0 = vector.load %arg3[%c0, %c0_0] : memref<16x256xbf16, #tpu.memory_space<vmem>>, vector<16x256xbf16>
    %c0_1 = arith.constant 0 : index
    %c0_2 = arith.constant 0 : index
    %1 = vector.load %arg4[%c0_1, %c0_2] : memref<256x512xbf16, #tpu.memory_space<vmem>>, vector<256x512xbf16>
    %cst = arith.constant dense<0.000000e+00> : vector<16x512xf32>
    %2 = tpu.matmul %0, %1, %cst {dimension_numbers = #tpu.dot_dimension_numbers<[1], [0], [0], [1], [0, 0, 1, 1], [], []>} : vector<16x256xbf16>, vector<256x512xbf16>, vector<16x512xf32> -> vector<16x512xf32>
    %3 = arith.truncf %2 : vector<16x512xf32> to vector<16x512xbf16>
    %c0_3 = arith.constant 0 : index
    %c0_4 = arith.constant 0 : index
    %4 = vector.load %arg5[%c0_3, %c0_4] : memref<16x512xbf16, #tpu.memory_space<vmem>>, vector<16x512xbf16>
    tpu.vector_store %arg5[%c0_3, %c0_4], %3 {strides = array<i32>} : memref<16x512xbf16, #tpu.memory_space<vmem>>, vector<16x512xbf16>,
    return
  }
  func.func @transform_0(%arg0: i32, %arg1: i32, %arg2: i32) -> (i32, i32) {
    %c0_i32 = arith.constant 0 : i32
    return %arg0, %arg2 : i32, i32
  }
  func.func @transform_1(%arg0: i32, %arg1: i32, %arg2: i32) -> (i32, i32) {
    %c0_i32 = arith.constant 0 : i32
    return %arg2, %arg1 : i32, i32
  }
  func.func @transform_2(%arg0: i32, %arg1: i32, %arg2: i32) -> (i32, i32) {
    %c0_i32 = arith.constant 0 : i32
    return %arg0, %arg1 : i32, i32
  }
}

</mosaic_0001>

<bundles_post_ra>
// kernel: tpu_custom_call.1
= control target key start
LH: loop header
LB: loop body
LE: loop exit
PB: predicated region body
PF: predicated region fallthrough
CT: control target
= control target key end

     0   :  { %7 = vsyncpa [#allocation3], 0  ;;  %s884_s0 = inlined_call_operand.hbm [shape: bf16[16,256], index: 0, kind: input, shape index: {}]   ;;  %s885_s1 = inlined_call_operand.hbm [shape: bf16[256,512], index: 1, kind: input, shape index: {}]   ;;  %s886_s2 = inlined_call_operand.hbm [shape: bf16[16,512], index: 2, kind: output, shape index: {}]  }
   0x1   :  { %8 = vsyncpa [#allocation6], 0 }
   0x2   :  { %9 = vsyncpa [#allocation4], 0  ;;  %s820_s9 = smov [#allocation2]   ;;  %s748_s13 = scalar_lea.hbm %s884_s0, 256 }
   0x3   :  { %s15_s10 = sshll.u32 %s820_s9, 4  ;;  %p749_p0 = scmp.ne.s32.totalorder %s884_s0, %s748_s13  ;;  %s16_s10 = int_to_ptr.vmem [resolvable:$true] %s15_s10 }
   0x4   :  { %p752_p1 = scmp.lt.u32.totalorder %s748_s13, %s884_s0 }
   0x6   :  { %p754_p2 = pnand %p752_p1, %p749_p0 }
   0x8   :  { %757 = shalt.err (!%p754_p2)
}
   0x9   :  { %s758_s18 = scalar_lea.vmem %s16_s10, 256  ;;  %p763_p4 = scmp.lt.s32.totalorder %s16_s10, %s16_s10 }
   0xa   :  { %p759_p3 = scmp.ne.s32.totalorder %s16_s10, %s758_s18  ;;  %p764_p5 = scmp.lt.s32.totalorder %s758_s18, %s758_s18 }
   0xc   :  { %p765_p6 = por %p764_p5, %p763_p4 }
   0xe   :  { %p766_p7 = pnand %p765_p6, %p759_p3 }
  0x10   :  { %769 = shalt.err (!%p766_p7)
}
  0x11   :  { %s821_s19 = smov 128   ;;  %s822_s20 = smov 8  }
  0x12   :  { %21 = dma.hbm_to_vmem [thread:$0]  %s884_s0, 256, %s16_s10, [#allocation3], %s821_s19, %s821_s19, %s822_s20  }
  0x13   :  { %s823_s23 = smov [#allocation5]   ;;  %s770_s27 = scalar_lea.hbm %s885_s1, 8192 }
  0x14   :  { %s27_s24 = sshll.u32 %s823_s23, 4  ;;  %p771_p8 = scmp.ne.s32.totalorder %s885_s1, %s770_s27  ;;  %s28_s24 = int_to_ptr.vmem [resolvable:$true] %s27_s24 }
  0x15   :  { %p774_p9 = scmp.lt.u32.totalorder %s770_s27, %s885_s1 }
  0x17   :  { %p776_p10 = pnand %p774_p9, %p771_p8 }
  0x19   :  { %779 = shalt.err (!%p776_p10)
}
  0x1a   :  { %s780_s4 = scalar_lea.vmem %s28_s24, 8192  ;;  %p785_p12 = scmp.lt.s32.totalorder %s28_s24, %s28_s24 }
  0x1b   :  { %p781_p11 = scmp.ne.s32.totalorder %s28_s24, %s780_s4  ;;  %p786_p13 = scmp.lt.s32.totalorder %s780_s4, %s780_s4 }
  0x1d   :  { %p787_p0 = por %p786_p13, %p785_p12 }
  0x1f   :  { %p788_p1 = pnand %p787_p0, %p781_p11 }
  0x21   :  { %791 = shalt.err (!%p788_p1)
}
  0x22   :  { %s824_s0 = smov 256   ;;  %s825_s5 = smov 16  }
  0x23   :  { %33 = dma.hbm_to_vmem [thread:$0]  %s885_s1, 8192, %s28_s24, [#allocation6], %s824_s0, %s824_s0, %s825_s5  }
  0x24   :  { %814 = dma.done.wait [#allocation3], 256  }
  0x25   :  { %815 = vsyncadd [#allocation3], 4294967040 }
  0x26   :  { %816 = dma.done.wait [#allocation6], 8192  }
  0x27   :  { %817 = vsyncadd [#allocation6], 4294959104  ;;  %v649_v0 = vld [vmem:[#allocation5 + $0x4] ss:$16 sps:$4 sm:$0xff]   ;;  %v651_v1 = vld [vmem:[#allocation5 + $0xc] ss:$16 sps:$4 sm:$0xff]  }
  0x28   :  { %436 = vmatprep.subr.bf16.mxu0 %v649_v0  ;;  %v653_v2 = vld [vmem:[#allocation5] ss:$16 sps:$4 sm:$0xff]   ;;  %v654_v3 = vld [vmem:[#allocation5 + $0x8] ss:$16 sps:$4 sm:$0xff]   ;;  %479 = vmatprep.subr.bf16.mxu1 %v651_v1  ;;  %v655_v4 = vld [vmem:[#allocation5 + $0x24] ss:$16 sps:$4 sm:$0xff]  }
  0x29   :  { %437 = vmatpush1.bf16.msra.mxu0 %v653_v2  ;;  %480 = vmatpush1.bf16.msra.mxu1 %v654_v3  ;;  %v657_v5 = vld [vmem:[#allocation5 + $0x2c] ss:$16 sps:$4 sm:$0xff]   ;;  %v659_v6 = vld [vmem:[#allocation5 + $0x20] ss:$16 sps:$4 sm:$0xff]   ;;  %v660_v7 = vld [vmem:[#allocation5 + $0x28] ss:$16 sps:$4 sm:$0xff]  }
  0x2a   :  { %438 = vmatprep.subr.bf16.mxu0 %v655_v4  ;;  %481 = vmatprep.subr.bf16.mxu1 %v657_v5  ;;  %v661_v8 = vld [vmem:[#allocation5 + $0x44] ss:$16 sps:$4 sm:$0xff]   ;;  %v663_v9 = vld [vmem:[#allocation5 + $0x4c] ss:$16 sps:$4 sm:$0xff]   ;;  %v665_v10 = vld [vmem:[#allocation5 + $0x40] ss:$16 sps:$4 sm:$0xff]  }
  0x2b   :  { %v666_v11 = vld [vmem:[#allocation5 + $0x48] ss:$16 sps:$4 sm:$0xff]   ;;  %v667_v12 = vld [vmem:[#allocation5 + $0x64] ss:$16 sps:$4 sm:$0xff]   ;;  %v669_v13 = vld [vmem:[#allocation5 + $0x6c] ss:$16 sps:$4 sm:$0xff]  }
  0x2c   :  { %v671_v14 = vld [vmem:[#allocation5 + $0x60] ss:$16 sps:$4 sm:$0xff]   ;;  %v672_v15 = vld [vmem:[#allocation5 + $0x68] ss:$16 sps:$4 sm:$0xff]   ;;  %v673_v16 = vld [vmem:[#allocation5 + $0x84] ss:$16 sps:$4 sm:$0xff]  }
  0x2d   :  { %439 = vmatpush1.bf16.msra.mxu0 %v659_v6  ;;  %482 = vmatpush1.bf16.msra.mxu1 %v660_v7  ;;  %v675_v17 = vld [vmem:[#allocation5 + $0x8c] ss:$16 sps:$4 sm:$0xff]   ;;  %v677_v18 = vld [vmem:[#allocation5 + $0x80] ss:$16 sps:$4 sm:$0xff]   ;;  %v678_v19 = vld [vmem:[#allocation5 + $0x88] ss:$16 sps:$4 sm:$0xff]  }
  0x2e   :  { %440 = vmatprep.subr.bf16.mxu0 %v661_v8  ;;  %483 = vmatprep.subr.bf16.mxu1 %v663_v9  ;;  %v679_v20 = vld [vmem:[#allocation5 + $0xa4] ss:$16 sps:$4 sm:$0xff]   ;;  %v681_v21 = vld [vmem:[#allocation5 + $0xac] ss:$16 sps:$4 sm:$0xff]   ;;  %v683_v22 = vld [vmem:[#allocation5 + $0xa0] ss:$16 sps:$4 sm:$0xff]  }
  0x2f   :  { %v684_v23 = vld [vmem:[#allocation5 + $0xa8] ss:$16 sps:$4 sm:$0xff]   ;;  %v685_v24 = vld [vmem:[#allocation5 + $0xc4] ss:$16 sps:$4 sm:$0xff]   ;;  %v687_v25 = vld [vmem:[#allocation5 + $0xcc] ss:$16 sps:$4 sm:$0xff]  }
  0x30   :  { %v689_v26 = vld [vmem:[#allocation5 + $0xc0] ss:$16 sps:$4 sm:$0xff]   ;;  %v690_v27 = vld [vmem:[#allocation5 + $0xc8] ss:$16 sps:$4 sm:$0xff]   ;;  %v691_v28 = vld [vmem:[#allocation5 + $0xe4] ss:$16 sps:$4 sm:$0xff]  }
  0x31   :  { %441 = vmatpush1.bf16.msra.mxu0 %v665_v10  ;;  %484 = vmatpush1.bf16.msra.mxu1 %v666_v11  ;;  %v693_v29 = vld [vmem:[#allocation5 + $0xec] ss:$16 sps:$4 sm:$0xff]   ;;  %v695_v30 = vld [vmem:[#allocation5 + $0xe0] ss:$16 sps:$4 sm:$0xff]   ;;  %v696_v31 = vld [vmem:[#allocation5 + $0xe8] ss:$16 sps:$4 sm:$0xff]  }
  0x32   :  { %442 = vmatprep.subr.bf16.mxu0 %v667_v12  ;;  %485 = vmatprep.subr.bf16.mxu1 %v669_v13  ;;  %v697_v32 = vld [vmem:[#allocation5 + $0x104] ss:$16 sps:$4 sm:$0xff]   ;;  %v699_v33 = vld [vmem:[#allocation5 + $0x10c] ss:$16 sps:$4 sm:$0xff]   ;;  %v701_v34 = vld [vmem:[#allocation5 + $0x100] ss:$16 sps:$4 sm:$0xff]  }
  0x33   :  { %v702_v35 = vld [vmem:[#allocation5 + $0x108] ss:$16 sps:$4 sm:$0xff]   ;;  %v703_v36 = vld [vmem:[#allocation5 + $0x124] ss:$16 sps:$4 sm:$0xff]   ;;  %v705_v37 = vld [vmem:[#allocation5 + $0x12c] ss:$16 sps:$4 sm:$0xff]  }
  0x34   :  { %v707_v38 = vld [vmem:[#allocation5 + $0x120] ss:$16 sps:$4 sm:$0xff]   ;;  %v708_v39 = vld [vmem:[#allocation5 + $0x128] ss:$16 sps:$4 sm:$0xff]   ;;  %v709_v40 = vld [vmem:[#allocation5 + $0x144] ss:$16 sps:$4 sm:$0xff]  }
  0x35   :  { %443 = vmatpush1.bf16.msra.mxu0 %v671_v14  ;;  %486 = vmatpush1.bf16.msra.mxu1 %v672_v15  ;;  %v711_v41 = vld [vmem:[#allocation5 + $0x14c] ss:$16 sps:$4 sm:$0xff]   ;;  %v713_v42 = vld [vmem:[#allocation5 + $0x140] ss:$16 sps:$4 sm:$0xff]   ;;  %v714_v43 = vld [vmem:[#allocation5 + $0x148] ss:$16 sps:$4 sm:$0xff]  }
  0x36   :  { %444 = vmatprep.subr.bf16.mxu0 %v673_v16  ;;  %487 = vmatprep.subr.bf16.mxu1 %v675_v17  ;;  %v715_v44 = vld [vmem:[#allocation5 + $0x164] ss:$16 sps:$4 sm:$0xff]   ;;  %v717_v45 = vld [vmem:[#allocation5 + $0x16c] ss:$16 sps:$4 sm:$0xff]   ;;  %v719_v47 = vld [vmem:[#allocation5 + $0x160] ss:$16 sps:$4 sm:$0xff]  }
  0x37   :  { %v747_v46 = vld [vmem:[#allocation2 + $0x4] ss:$8 sps:$4 sm:$0xff]   ;;  %v720_v48 = vld [vmem:[#allocation5 + $0x168] ss:$16 sps:$4 sm:$0xff]   ;;  %v725_v51 = vld [vmem:[#allocation5 + $0x180] ss:$16 sps:$4 sm:$0xff]  }
  0x38   :  { %v721_v49 = vld [vmem:[#allocation5 + $0x184] ss:$16 sps:$4 sm:$0xff]   ;;  %v723_v50 = vld [vmem:[#allocation5 + $0x18c] ss:$16 sps:$4 sm:$0xff]   ;;  %468 = vmatprep.mubr.bf16.mxu0 %v747_v46  ;;  %511 = vmatprep.mubr.bf16.mxu1 %v747_v46  ;;  %v726_v52 = vld [vmem:[#allocation5 + $0x188] ss:$16 sps:$4 sm:$0xff]  }
  0x39   :  { %445 = vmatpush1.bf16.msra.mxu0 %v677_v18  ;;  %488 = vmatpush1.bf16.msra.mxu1 %v678_v19  ;;  %v727_v53 = vld [vmem:[#allocation5 + $0x1a4] ss:$16 sps:$4 sm:$0xff]   ;;  %v729_v54 = vld [vmem:[#allocation5 + $0x1ac] ss:$16 sps:$4 sm:$0xff]   ;;  %v731_v55 = vld [vmem:[#allocation5 + $0x1a0] ss:$16 sps:$4 sm:$0xff]  }
  0x3a   :  { %446 = vmatprep.subr.bf16.mxu0 %v679_v20  ;;  %489 = vmatprep.subr.bf16.mxu1 %v681_v21  ;;  %v732_v56 = vld [vmem:[#allocation5 + $0x1a8] ss:$16 sps:$4 sm:$0xff]   ;;  %v733_v57 = vld [vmem:[#allocation5 + $0x1c4] ss:$16 sps:$4 sm:$0xff]   ;;  %v735_v58 = vld [vmem:[#allocation5 + $0x1cc] ss:$16 sps:$4 sm:$0xff]  }
  0x3b   :  { %v737_v59 = vld [vmem:[#allocation5 + $0x1c0] ss:$16 sps:$4 sm:$0xff]   ;;  %v738_v60 = vld [vmem:[#allocation5 + $0x1c8] ss:$16 sps:$4 sm:$0xff]   ;;  %v739_v61 = vld [vmem:[#allocation5 + $0x1e4] ss:$16 sps:$4 sm:$0xff]  }
  0x3c   :  { %v741_v62 = vld [vmem:[#allocation5 + $0x1ec] ss:$16 sps:$4 sm:$0xff]   ;;  %v743_v63 = vld [vmem:[#allocation5 + $0x1e0] ss:$16 sps:$4 sm:$0xff]   ;;  %v744_v0 = vld [vmem:[#allocation5 + $0x1e8] ss:$16 sps:$4 sm:$0xff]  }
  0x3d   :  { %447 = vmatpush1.bf16.msra.mxu0 %v683_v22  ;;  %490 = vmatpush1.bf16.msra.mxu1 %v684_v23  ;;  %v745_v1 = vld [vmem:[#allocation2] ss:$8 sps:$4 sm:$0xff]   ;;  %s826_s1 = smov [#allocation7]  }
  0x3e   :  { %448 = vmatprep.subr.bf16.mxu0 %v685_v24  ;;  %491 = vmatprep.subr.bf16.mxu1 %v687_v25  ;;  %s555_s8 = sshll.u32 %s826_s1, 4  ;;  %s556_s8 = int_to_ptr.vmem [resolvable:$true] %s555_s8 }
  0x3f   :  { %s792_s9 = scalar_lea.vmem %s556_s8, 512  ;;  %p797_p3 = scmp.lt.s32.totalorder %s556_s8, %s556_s8 }
  0x40   :  { %p793_p2 = scmp.ne.s32.totalorder %s556_s8, %s792_s9  ;;  %p798_p4 = scmp.lt.s32.totalorder %s792_s9, %s792_s9 }
  0x41   :  { %449 = vmatpush1.bf16.msra.mxu0 %v689_v26  ;;  %492 = vmatpush1.bf16.msra.mxu1 %v690_v27 }
  0x42   :  { %450 = vmatprep.subr.bf16.mxu0 %v691_v28  ;;  %493 = vmatprep.subr.bf16.mxu1 %v693_v29  ;;  %p799_p5 = por %p798_p4, %p797_p3 }
  0x44   :  { %p800_p6 = pnand %p799_p5, %p793_p2 }
  0x45   :  { %451 = vmatpush1.bf16.msra.mxu0 %v695_v30  ;;  %494 = vmatpush1.bf16.msra.mxu1 %v696_v31 }
  0x46   :  { %452 = vmatprep.subr.bf16.mxu0 %v697_v32  ;;  %495 = vmatprep.subr.bf16.mxu1 %v699_v33 }
  0x49   :  { %453 = vmatpush1.bf16.msra.mxu0 %v701_v34  ;;  %496 = vmatpush1.bf16.msra.mxu1 %v702_v35 }
  0x4a   :  { %454 = vmatprep.subr.bf16.mxu0 %v703_v36  ;;  %497 = vmatprep.subr.bf16.mxu1 %v705_v37 }
  0x4d   :  { %455 = vmatpush1.bf16.msra.mxu0 %v707_v38  ;;  %498 = vmatpush1.bf16.msra.mxu1 %v708_v39 }
  0x4e   :  { %456 = vmatprep.subr.bf16.mxu0 %v709_v40  ;;  %499 = vmatprep.subr.bf16.mxu1 %v711_v41 }
  0x51   :  { %457 = vmatpush1.bf16.msra.mxu0 %v713_v42  ;;  %500 = vmatpush1.bf16.msra.mxu1 %v714_v43 }
  0x52   :  { %458 = vmatprep.subr.bf16.mxu0 %v715_v44  ;;  %501 = vmatprep.subr.bf16.mxu1 %v717_v45 }
  0x55   :  { %459 = vmatpush1.bf16.msra.mxu0 %v719_v47  ;;  %502 = vmatpush1.bf16.msra.mxu1 %v720_v48 }
  0x56   :  { %460 = vmatprep.subr.bf16.mxu0 %v721_v49  ;;  %503 = vmatprep.subr.bf16.mxu1 %v723_v50 }
  0x59   :  { %461 = vmatpush1.bf16.msra.mxu0 %v725_v51  ;;  %504 = vmatpush1.bf16.msra.mxu1 %v726_v52 }
  0x5a   :  { %462 = vmatprep.subr.bf16.mxu0 %v727_v53  ;;  %505 = vmatprep.subr.bf16.mxu1 %v729_v54 }
  0x5d   :  { %463 = vmatpush1.bf16.msra.mxu0 %v731_v55  ;;  %506 = vmatpush1.bf16.msra.mxu1 %v732_v56 }
  0x5e   :  { %464 = vmatprep.subr.bf16.mxu0 %v733_v57  ;;  %507 = vmatprep.subr.bf16.mxu1 %v735_v58 }
  0x61   :  { %465 = vmatpush1.bf16.msra.mxu0 %v737_v59  ;;  %508 = vmatpush1.bf16.msra.mxu1 %v738_v60 }
  0x62   :  { %466 = vmatprep.subr.bf16.mxu0 %v739_v61  ;;  %509 = vmatprep.subr.bf16.mxu1 %v741_v62 }
  0x65   :  { %467 = vmatpush1.bf16.msra.mxu0 %v743_v63  ;;  %510 = vmatpush1.bf16.msra.mxu1 %v744_v0 }
  0x68   :  { %469 = vmatmul.mubr.bf16.vlgmr.msra.gmra.mrb[0].mxu0 %v745_v1  ;;  %512 = vmatmul.mubr.bf16.vlgmr.msra.gmra.mrb[0].mxu1 %v745_v1 }
 0x13b   :  { %v470_v2 = vpop.f32.mrb[0].mxu0  ;;  %v513_v3 = vpop.f32.mrb[0].mxu1 }
 0x13c   :  { %v472_v4 = vpop.f32.mrb[1].mxu0  ;;  %v515_v5 = vpop.f32.mrb[1].mxu1 }
 0x13d   :  { %v638_v6 = vpack.c.bf16 %v472_v4, %v470_v2  ;;  %v639_v7 = vpack.c.bf16 %v515_v5, %v513_v3  ;;  %v474_v8 = vpop.f32.mrb[2].mxu0  ;;  %v517_v9 = vpop.f32.mrb[2].mxu1 }
 0x13e   :  { %v476_v10 = vpop.f32.mrb[3].mxu0  ;;  %v519_v11 = vpop.f32.mrb[3].mxu1 }
 0x13f   :  { %546 = vst [vmem:[#allocation7] sm:$0xff] %v638_v6  ;;  %547 = vst [vmem:[#allocation7 + $0x8] sm:$0xff] %v639_v7  ;;  %v640_v12 = vpack.c.bf16 %v476_v10, %v474_v8  ;;  %v641_v13 = vpack.c.bf16 %v519_v11, %v517_v9 }
 0x141   :  { %548 = vst [vmem:[#allocation7 + $0x10] sm:$0xff] %v640_v12  ;;  %549 = vst [vmem:[#allocation7 + $0x18] sm:$0xff] %v641_v13 }
 0x142   :  { %803 = shalt.err (!%p800_p6)
}
 0x143   :  { %s804_s12 = scalar_lea.hbm %s886_s2, 512 }
 0x144   :  { %p805_p7 = scmp.ne.s32.totalorder %s886_s2, %s804_s12  ;;  %p808_p8 = scmp.lt.u32.totalorder %s804_s12, %s886_s2 }
 0x146   :  { %p810_p9 = pnand %p808_p8, %p805_p7 }
 0x148   :  { %813 = shalt.err (!%p810_p9)
}
 0x149   :  { %561 = dma.vmem_to_hbm [thread:$0]  %s556_s8, 512, %s886_s2, [#allocation4], %s824_s0, %s824_s0, %s825_s5  }
 0x14a   :  { %818 = dma.done.wait [#allocation4], 512  }
 0x14b   :  { %819 = vsyncadd [#allocation4], 4294966784 }
 0x14c   :  { %565 = vsyncpa [#allocation3], 1 }
 0x14d   :  { %566 = vsyncpa [#allocation6], 1 }
 0x14e   :  { %567 = vsyncpa [#allocation4], 1 }

</bundles_post_ra>
